<compile_context>
chip_gen: v7x
topology: tpu7x:2x2x1
jax: 0.10.0
libtpu: 0.0.40
codegen_flags: <defaults>
</compile_context>

<pallas_src>
import jax
import jax.numpy as jnp
from jax.experimental import pallas as pl
from jax.experimental.pallas import tpu as pltpu


def _round_up(a, b):
    return (a + b - 1) // b * b


def _glu_kernel(x_ref, w12_ref, b12_ref, w3_ref, b3_ref, o_ref):
    """One (bn, C, tile_p) tile; channels on sublanes, pixels on lanes.

    x_ref   : (bn, C, tile_p)  input pixels, stored dtype (no upcast)
    w12_ref : (2*C8, C)        conv1 || conv2 weights (out-ch padded to C8)
    b12_ref : (2*C8, 1)        conv1 || conv2 biases, f32
    w3_ref  : (C, C)           conv3 weight
    b3_ref  : (C, 1)           conv3 bias, f32
    o_ref   : (bn, C, tile_p)
    """
    C = w3_ref.shape[0]
    C8 = w12_ref.shape[0] // 2
    bn = x_ref.shape[0]

    # Hoist weight/bias loads out of the (small, static) batch loop.
    w12 = w12_ref[...]
    w3 = w3_ref[...]
    b12 = b12_ref[...]
    b3 = b3_ref[...]

    for b in range(bn):                       # bn is static & small -> unrolled
        x = x_ref[b]                          # (C, tile_p), stored dtype
        # Fused conv1 || conv2: one MXU matmul, f32 accumulation.
        y12 = jnp.dot(w12, x, preferred_element_type=jnp.float32) + b12
        x1 = y12[:C, :]                       # starts at sublane 0
        x2 = y12[C8:C8 + C, :]                # starts at a multiple-of-8 sublane
        # GLU gate in f32 (v5e has no bf16 VPU/EUP path); exp goes to EUP.
        gated = x1 * jax.nn.sigmoid(x2)
        # TODO(synk): training-mode dropout (pltpu.prng_* mask) omitted; eval-mode identity.
        out = jnp.dot(w3, gated.astype(w3.dtype),
                      preferred_element_type=jnp.float32) + b3
        o_ref[b] = out.astype(o_ref.dtype)


def _const_block_spec(shape):
    """Grid-invariant block; single-buffered when the jax version supports it."""
    index_map = lambda n, p: (0,) * len(shape)
    buffered = getattr(pl, "Buffered", None)
    if buffered is not None:
        try:
            return pl.BlockSpec(shape, index_map, pipeline_mode=buffered(1))
        except TypeError:  # older jax without pipeline_mode kwarg
            pass
    return pl.BlockSpec(shape, index_map)


def glu_pallas(x_nchw, w1, b1, w2, b2, w3, b3, *, tile_p=None, bn=None,
               vmem_budget_bytes=24 * 1024 * 1024):
    """GLU forward (eval mode).

    x_nchw : (N, C, H, W)   any float dtype; bf16 gives the native MXU path
    w*     : (C, C)         == torch conv weight[:, :, 0, 0]
    b*     : (C,)
    """
    N, C, H, W = x_nchw.shape
    P = H * W
    dtype = x_nchw.dtype
    itemsize = jnp.dtype(dtype).itemsize

    # ---- host-side parameter prep (tiny tensors; no activation pads) -------
    C8 = _round_up(C, 8)
    pad_c = C8 - C
    w1p = jnp.pad(w1, ((0, pad_c), (0, 0)))
    w2p = jnp.pad(w2, ((0, pad_c), (0, 0)))
    b1p = jnp.pad(b1, (0, pad_c))
    b2p = jnp.pad(b2, (0, pad_c))
    # Weights stay in the activation dtype (bf16 -> native MXU; never force f32).
    w12 = jnp.concatenate([w1p, w2p], axis=0).astype(dtype)            # (2*C8, C)
    w3c = w3.astype(dtype)                                             # (C, C)
    # Biases are tiny; keep f32 so they add in the f32 accumulation domain.
    b12 = jnp.concatenate([b1p, b2p], axis=0).reshape(2 * C8, 1).astype(jnp.float32)
    b3c = b3.reshape(C, 1).astype(jnp.float32)

    # Pure view: (N, C, P) with the pixel axis lane-dense. No relayout.
    x = x_nchw.reshape(N, C, P)

    # ---- tile selection ------------------------------------------------------
    # Per-pixel-column VMEM bytes for one batch row of a grid step:
    #   in + out tiles (double-buffered) + f32 intermediates (y12, gated/out).
    per_px = 2 * 2 * C * itemsize + (2 * C8 + 2 * C) * 4
    P128 = _round_up(P, 128)
    auto_tile = tile_p is None
    if auto_tile:
        cap = 8192                              # big lane-dense tiles (v5e/v6e)
        tp = (vmem_budget_bytes // per_px) // 128 * 128
        tile_p = int(max(128, min(cap, tp, P128)))
    # Keep >= 2 grid steps when there is only one batch row (v7x has 2 TCs).
    if auto_tile and N == 1 and tile_p >= P and P >= 256:
        tile_p = _round_up(pl.cdiv(P, 2), 128)
    if tile_p >= P:
        tile_p = P                              # full-dim block: no padding needed
    grid_p = pl.cdiv(P, tile_p)                 # partial last tile is OOB-masked

    if bn is None:
        bn = 1
        if grid_p == 1 and N > 1:
            # Small per-batch pixel count: pack batch rows to amortize the
            # ~0.35 us per-grid-step overhead, but keep >= 2 steps total.
            bytes_per_row = per_px * tile_p
            max_bn = int(max(1, vmem_budget_bytes // max(1, bytes_per_row)))
            max_bn = min(max_bn, 16, max(1, N // 2))
            bn = max(d for d in range(1, max_bn + 1) if N % d == 0)
    grid_n = pl.cdiv(N, bn)

    # ---- specs ---------------------------------------------------------------
    x_spec = pl.BlockSpec((bn, C, tile_p), lambda n, p: (n, 0, p))
    o_spec = pl.BlockSpec((bn, C, tile_p), lambda n, p: (n, 0, p))
    w12_spec = _const_block_spec((2 * C8, C))
    b12_spec = _const_block_spec((2 * C8, 1))
    w3_spec = _const_block_spec((C, C))
    b3_spec = _const_block_spec((C, 1))

    out = pl.pallas_call(
        _glu_kernel,
        out_shape=jax.ShapeDtypeStruct((N, C, P), dtype),
        grid_spec=pltpu.PrefetchScalarGridSpec(
            num_scalar_prefetch=0,
            grid=(grid_n, grid_p),
            in_specs=[x_spec, w12_spec, b12_spec, w3_spec, b3_spec],
            out_specs=o_spec,
        ),
        compiler_params=pltpu.CompilerParams(
            dimension_semantics=("parallel", "parallel"),
            vmem_limit_bytes=48 * 1024 * 1024),
    )(x, w12, b12, w3c, b3c)

    return out.reshape(N, C, H, W)


def glu_reference(x_nchw, w1, b1, w2, b2, w3, b3):
    """Pure-JAX reference matching PyTorch semantics (eval-mode dropout)."""
    def conv1x1(x, w, b):
        y = jnp.einsum('nchw,oc->nohw', x, w, precision='highest')
        return y + b[None, :, None, None]
    x1 = conv1x1(x_nchw, w1, b1)
    x2 = conv1x1(x_nchw, w2, b2)
    out = x1 * jax.nn.sigmoid(x2)
    return conv1x1(out, w3, b3)


if __name__ == "__main__":
    key = jax.random.PRNGKey(0)
    N, C, H, W = 2, 4, 16, 16  # features = C = 4

    k = jax.random.split(key, 7)
    x = jax.random.normal(k[0], (N, C, H, W), dtype=jnp.float32)

    # Deterministic parameter init (PyTorch-like uniform bounds for 1x1 convs).
    bound = 1.0 / (C ** 0.5)
    w1 = jax.random.uniform(k[1], (C, C), minval=-bound, maxval=bound, dtype=jnp.float32)
    b1 = jax.random.uniform(k[2], (C,), minval=-bound, maxval=bound, dtype=jnp.float32)
    w2 = jax.random.uniform(k[3], (C, C), minval=-bound, maxval=bound, dtype=jnp.float32)
    b2 = jax.random.uniform(k[4], (C,), minval=-bound, maxval=bound, dtype=jnp.float32)
    w3 = jax.random.uniform(k[5], (C, C), minval=-bound, maxval=bound, dtype=jnp.float32)
    b3 = jax.random.uniform(k[6], (C,), minval=-bound, maxval=bound, dtype=jnp.float32)

    ref = glu_reference(x, w1, b1, w2, b2, w3, b3)

    # f32 path (multi-pass MXU, f32 accumulation): tight tolerance.
    out = glu_pallas(x, w1, b1, w2, b2, w3, b3)
    out = jax.block_until_ready(out)
    assert out.shape == (N, C, H, W)
    assert jnp.allclose(out, ref, atol=1e-4, rtol=1e-4), "f32 mismatch vs reference"

    # bf16 activation/weight path (native MXU fast path): loosened tolerance,
    # per review — bf16 operand rounding, f32 accumulation.
    xb = x.astype(jnp.bfloat16)
    outb = glu_pallas(xb, w1, b1, w2, b2, w3, b3)
    outb = jax.block_until_ready(outb)
    assert outb.dtype == jnp.bfloat16
    assert jnp.allclose(outb.astype(jnp.float32), ref, atol=1e-1, rtol=1e-1), \
        "bf16 mismatch vs reference"

    print("KERNEL_OK")
</pallas_src>

<mosaic_0001>
module attributes {stable_mosaic.version = 11 : i64} {
  func.func @_glu_kernel(%arg0: i32, %arg1: i32, %arg2: memref<1x4x256xf32, #tpu.memory_space<vmem>>, %arg3: memref<16x4xf32, #tpu.memory_space<vmem>>, %arg4: memref<16x1xf32, #tpu.memory_space<vmem>>, %arg5: memref<4x4xf32, #tpu.memory_space<vmem>>, %arg6: memref<4x1xf32, #tpu.memory_space<vmem>>, %arg7: memref<1x4x256xf32, #tpu.memory_space<vmem>>) attributes {dimension_semantics = [#tpu.dimension_semantics<parallel>, #tpu.dimension_semantics<parallel>], iteration_bounds = array<i64: 2, 1>, scalar_prefetch = 0 : i64, scratch_operands = 0 : i64, tpu.core_type = #tpu.core_type<tc>, window_params = [{transform_indices = @transform_0, window_bounds = array<i64: 1, 4, 256>}, {pipeline_mode = #tpu.pipeline_mode<synchronous>, transform_indices = @transform_1, window_bounds = array<i64: 16, 4>}, {pipeline_mode = #tpu.pipeline_mode<synchronous>, transform_indices = @transform_2, window_bounds = array<i64: 16, 1>}, {pipeline_mode = #tpu.pipeline_mode<synchronous>, transform_indices = @transform_3, window_bounds = array<i64: 4, 4>}, {pipeline_mode = #tpu.pipeline_mode<synchronous>, transform_indices = @transform_4, window_bounds = array<i64: 4, 1>}, {transform_indices = @transform_5, window_bounds = array<i64: 1, 4, 256>}]} {
    %c0 = arith.constant 0 : index
    %c0_0 = arith.constant 0 : index
    %0 = vector.load %arg3[%c0, %c0_0] : memref<16x4xf32, #tpu.memory_space<vmem>>, vector<16x4xf32>
    %c0_1 = arith.constant 0 : index
    %c0_2 = arith.constant 0 : index
    %1 = vector.load %arg5[%c0_1, %c0_2] : memref<4x4xf32, #tpu.memory_space<vmem>>, vector<4x4xf32>
    %c0_3 = arith.constant 0 : index
    %c0_4 = arith.constant 0 : index
    %2 = vector.load %arg4[%c0_3, %c0_4] : memref<16x1xf32, #tpu.memory_space<vmem>>, vector<16x1xf32>
    %c0_5 = arith.constant 0 : index
    %c0_6 = arith.constant 0 : index
    %3 = vector.load %arg6[%c0_5, %c0_6] : memref<4x1xf32, #tpu.memory_space<vmem>>, vector<4x1xf32>
    %c0_7 = arith.constant 0 : index
    %c0_8 = arith.constant 0 : index
    %c0_9 = arith.constant 0 : index
    %4 = vector.load %arg2[%c0_7, %c0_8, %c0_9] : memref<1x4x256xf32, #tpu.memory_space<vmem>>, vector<1x4x256xf32>
    %5 = vector.shape_cast %4 : vector<1x4x256xf32> to vector<4x256xf32>
    %cst = arith.constant dense<0.000000e+00> : vector<16x256xf32>
    %6 = tpu.matmul %0, %5, %cst {dimension_numbers = #tpu.dot_dimension_numbers<[1], [0], [0], [1], [0, 0, 1, 1], [], []>} : vector<16x4xf32>, vector<4x256xf32>, vector<16x256xf32> -> vector<16x256xf32>
    %7 = vector.broadcast %2 : vector<16x1xf32> to vector<16x256xf32>
    %8 = arith.addf %6, %7 : vector<16x256xf32>
    %9 = vector.extract_strided_slice %8 {offsets = [0, 0], sizes = [4, 256], strides = [1, 1]} : vector<16x256xf32> to vector<4x256xf32>
    %10 = vector.extract_strided_slice %8 {offsets = [8, 0], sizes = [4, 256], strides = [1, 1]} : vector<16x256xf32> to vector<4x256xf32>
    %11 = arith.negf %10 : vector<4x256xf32>
    %12 = math.exp %11 : vector<4x256xf32>
    %cst_10 = arith.constant 1.000000e+00 : f32
    %13 = vector.broadcast %cst_10 : f32 to vector<4x256xf32>
    %14 = arith.addf %13, %12 : vector<4x256xf32>
    %15 = arith.divf %13, %14 : vector<4x256xf32>
    %16 = arith.mulf %9, %15 : vector<4x256xf32>
    %cst_11 = arith.constant dense<0.000000e+00> : vector<4x256xf32>
    %17 = tpu.matmul %1, %16, %cst_11 {dimension_numbers = #tpu.dot_dimension_numbers<[1], [0], [0], [1], [0, 0, 1, 1], [], []>} : vector<4x4xf32>, vector<4x256xf32>, vector<4x256xf32> -> vector<4x256xf32>
    %18 = vector.broadcast %3 : vector<4x1xf32> to vector<4x256xf32>
    %19 = arith.addf %17, %18 : vector<4x256xf32>
    %c0_12 = arith.constant 0 : index
    %c0_13 = arith.constant 0 : index
    %c0_14 = arith.constant 0 : index
    %20 = vector.load %arg7[%c0_12, %c0_13, %c0_14] : memref<1x4x256xf32, #tpu.memory_space<vmem>>, vector<1x4x256xf32>
    %21 = vector.shape_cast %20 : vector<1x4x256xf32> to vector<4x256xf32>
    %22 = vector.shape_cast %19 : vector<4x256xf32> to vector<1x4x256xf32>
    tpu.vector_store %arg7[%c0_12, %c0_13, %c0_14], %22 {strides = array<i32>} : memref<1x4x256xf32, #tpu.memory_space<vmem>>, vector<1x4x256xf32>,
    return
  }
  func.func @transform_0(%arg0: i32, %arg1: i32) -> (i32, i32, i32) {
    %c0_i32 = arith.constant 0 : i32
    %c0_i32_0 = arith.constant 0 : i32
    return %arg0, %c0_i32, %arg1 : i32, i32, i32
  }
  func.func @transform_1(%arg0: i32, %arg1: i32) -> (i32, i32) {
    %c0_i32 = arith.constant 0 : i32
    %c0_i32_0 = arith.constant 0 : i32
    %c0_i32_1 = arith.constant 0 : i32
    return %c0_i32, %c0_i32_0 : i32, i32
  }
  func.func @transform_2(%arg0: i32, %arg1: i32) -> (i32, i32) {
    %c0_i32 = arith.constant 0 : i32
    %c0_i32_0 = arith.constant 0 : i32
    %c0_i32_1 = arith.constant 0 : i32
    return %c0_i32, %c0_i32_0 : i32, i32
  }
  func.func @transform_3(%arg0: i32, %arg1: i32) -> (i32, i32) {
    %c0_i32 = arith.constant 0 : i32
    %c0_i32_0 = arith.constant 0 : i32
    %c0_i32_1 = arith.constant 0 : i32
    return %c0_i32, %c0_i32_0 : i32, i32
  }
  func.func @transform_4(%arg0: i32, %arg1: i32) -> (i32, i32) {
    %c0_i32 = arith.constant 0 : i32
    %c0_i32_0 = arith.constant 0 : i32
    %c0_i32_1 = arith.constant 0 : i32
    return %c0_i32, %c0_i32_0 : i32, i32
  }
  func.func @transform_5(%arg0: i32, %arg1: i32) -> (i32, i32, i32) {
    %c0_i32 = arith.constant 0 : i32
    %c0_i32_0 = arith.constant 0 : i32
    return %arg0, %c0_i32, %arg1 : i32, i32, i32
  }
}

</mosaic_0001>

<bundles_post_ra>
// kernel: tpu_custom_call.1
= control target key start
LH: loop header
LB: loop body
LE: loop exit
PB: predicated region body
PF: predicated region fallthrough
CT: control target
= control target key end

     0   :  { %10 = vsyncpa [#allocation3], 0  ;;  %s901_s0 = inlined_call_operand.vmem [shape: f32[2,4,256], index: 0, kind: input, shape index: {}]   ;;  %s902_s1 = inlined_call_operand.vmem [shape: f32[16,4], index: 1, kind: input, shape index: {}]   ;;  %s903_s2 = inlined_call_operand.vmem [shape: f32[16,1], index: 2, kind: input, shape index: {}]   ;;  %s904_s3 = inlined_call_operand.vmem [shape: f32[4,4], index: 3, kind: input, shape index: {}]   ;;  %s905_s4 = inlined_call_operand.vmem [shape: f32[4,1], index: 4, kind: input, shape index: {}]   ;;  %s906_s5 = inlined_call_operand.hbm [shape: f32[2,4,256], index: 5, kind: output, shape index: {}]  }
   0x1   :  { %12 = vsyncpa [#allocation3 + $0x1], 0  ;;  %s764_s18 = smov 0   ;;  %s766_s19 = smov 0  }
   0x2   :  { %s768_s20 = smov 0   ;;  %s770_s21 = smov 0  }
   0x3   :  { %s772_s22 = smov 0   ;;  %s774_s23 = smov 0  }
   0x4 LB: > { %s559_s24 = sadd.s32 4294967295, %s729_s23   ;;  %s560_s25 = sadd.s32 4294967294, %s729_s23   ;;  %s729_s23 = sphi %s774_s23, %s18_s23   ;;  %s725_s22 = sphi %s772_s22, %s913_s22   ;;  %s721_s21 = sphi %s770_s21, %s912_s21   ;;  %s717_s20 = sphi %s768_s20, %s911_s20   ;;  %s713_s19 = sphi %s766_s19, %s910_s19   ;;  %s709_s18 = sphi %s764_s18, %s909_s18  }
   0x5   : > { %s30_s26 = sadd.s32 1, %s725_s22  ;;  %s151_s27 = sadd.s32 1, %s717_s20 }
   0x6   : > { %p32_p0 = scmp.ge.s32.totalorder %s30_s26, 2  ;;  %p161_p1 = scmp.ne.s32.totalorder %s717_s20, %s713_s19 }
   0x7   : > { %p162_p2 = scmp.eq.s32.totalorder %s559_s24, 1  ;;  %p167_p3 = scmp.ne.s32.totalorder %s713_s19, %s709_s18 }
   0x8   : > { %s915_s26 = smov (%p32_p0, %s30_s26), 0  ;;  %p168_p5 = scmp.eq.s32.totalorder %s560_s25, 1 }
   0x9   : > { %p804_p4 = por %p162_p2, %p161_p1  ;;  %s146_s29 = ssub.s32 %s725_s22, %s915_s26 }
   0xa   : > { %p563_p6 = scmp.ge.s32.totalorder %s729_s23, 1  ;;  %p149_p7 = scmp.eq.s32.totalorder %s146_s29, 0 }
   0xb   : > { %p811_p8 = por %p168_p5, %p167_p3  ;;  %p211_p9 = scmp.lt.s32.totalorder %s729_s23, 3 }
   0xc   : > { %s817_s6 = scalar_select %p149_p7, %s717_s20, %s151_s27  }
   0xd   : > { %p212_p10 = pnand %p563_p6, %p211_p9 }
   0xe   : > { %p244_p11 = scmp.lt.s32.totalorder (!%p212_p10), %s721_s21, 1  ;;  %v731_v0 = vmov (!%p212_p10), 0.0   ;;  %v258_v1 = vld [vmem:[%s903_s2 + $0x8] sm:$0xff] (!%p212_p10)  ;;  %v732_v2 = vmov (!%p212_p10), 0   ;;  %v257_v3 = vld [vmem:[%s903_s2] sm:$0xff] (!%p212_p10)  ;;  %vm280_vm0 = vcmask (!%p212_p10), 1043456  }
   0xf   : > { %215 = sbr.rel (%p212_p10) target bundleno = 511 (0x1ff), region = 40  ;;  %349 = vmatprep.mubr.f32.mxu0 (!%p212_p10), %v731_v0  ;;  %454 = vmatprep.mubr.f32.mxu1 (!%p212_p10), %v731_v0  ;;  %v254_v6 = vld [vmem:[%s902_s1] sm:$0xff] (!%p212_p10)  ;;  %vm273_vm1 = vcmask (!%p212_p10), 31744   ;;  %v255_v7 = vld [vmem:[%s902_s1 + $0x8] sm:$0xff] (!%p212_p10)  ;;  %s582_s11 = sshll.u32 (!%p212_p10), %s721_s21, 7 }
  0x10   : > { %640 = vset.pattern.permute.xlu0 (!%p212_p10), %v732_v2  ;;  %641 = vset.pattern.permute.xlu1 (!%p212_p10), %v732_v2  ;;  %v259_v8 = vld [vmem:[%s905_s4] sm:$0xf] (!%p212_p10)  ;;  %s854_s16 = scalar_lea.hbm (!%p212_p10), %s906_s5, %s582_s11 }
  0x11   : > { %268 = vperm.xlu0 (!%p212_p10), %640, %v258_v1   ;;  %378 = vperm.xlu1 (!%p212_p10), %641, %v259_v8   ;;  %v256_v29 = vld [vmem:[%s904_s3] sm:$0xf] (!%p212_p10) }
  0x15   : > { %263 = vperm.xlu0 (!%p212_p10), %640, %v257_v3  }
  0x16   : > { %s245_s9 = scalar_select %p244_p11, %s721_s21, 1 }
  0x17   : > { %s733_s21 = smov [#allocation2]  }
  0x18   : > { %s581_s10 = sshll.u32 %s245_s9, 3  ;;  %s240_s9 = sand.u32 1, %s713_s19  }
  0x19   : > { %s251_s15 = scalar_lea.vmem %s901_s0, %s581_s10  ;;  %s564_s10 = sshll.u32 %s240_s9, 3 }
  0x1a   : > { %v260_v4 = vld [vmem:[%s251_s15] sm:$0xff]  ;;  %s242_s12 = scalar_lea.vmem [#allocation2], %s564_s10  ;;  %s467_s17 = scalar_lea.sflag [#allocation3], %s240_s9 }
  0x1b   : > { %v272_v5 = vcombine.high %v260_v4, %v260_v4  ;;  %s483_s13 = sshll.u32 %s242_s12, 4  ;;  %s655_s25 = sshll.u32 %s733_s21, 4  ;;  %s856_s13 = int_to_ptr.vmem [resolvable:$true] %s483_s13  ;;  %s656_s25 = int_to_ptr.vmem [resolvable:$false] %s655_s25 }
  0x1c   : > { %s651_s24 = scalar_lea.vmem %s856_s13, 128  ;;  %s657_s27 = scalar_lea.vmem %s656_s25, 256 }
  0x1d   : > { %567 = vmatprep.subr.msk.mxu0 %vm280_vm0, %v272_v5  ;;  %p652_p12 = scmp.ne.s32.totalorder %s856_s13, %s651_s24  ;;  %p658_p1 = scmp.lt.s32.totalorder %s856_s13, %s656_s25 }
  0x1e   : > { %568 = vmatpush1.msk.msra.mxu0 %vm280_vm0, %v260_v4  ;;  %p659_p2 = scmp.lt.s32.totalorder %s657_s27, %s651_s24 }
  0x1f   : > { %569 = vmatmul.mubr.msk.f32.vlgmr.msra.gmra.mrb[0].mxu0 %vm273_vm1, %v254_v6  ;;  %p653_p13 = pnand %p652_p12, %p804_p4 }
  0x20   : > { %355 = vmatprep.mubr.f32.mxu0 %v731_v0  ;;  %p660_p3 = por %p659_p2, %p658_p1 }
  0x21   : > { %p654_p0 = pneg %p653_p13 }
  0x23   : > { %570 = vmatmul.mubr.msk.f32.gmra.mrb[2].mxu0 %vm273_vm1, %v255_v7  ;;  %p661_p5 = pnand %p660_p3, %p654_p0 }
  0x90   : > { %v269_v11 = vpop.permute.xlu0 %268  ;;  %v379_v30 = vpop.permute.xlu1 %378 }
  0x94   : > { %v264_v22 = vpop.permute.xlu0 %263 }
  0xf2   : > { %v351_v9 = vpop.f32.mrb[0].mxu0 }
  0xf3   : > { %v353_v10 = vpop.f32.mrb[1].mxu0  ;;  %v352_v23 = vadd.f32 %v351_v9, %v264_v22 }
  0xf4   : > { %v354_v25 = vadd.f32 %v353_v10, %v264_v22 }
  0xf6   : > { %v357_v12 = vpop.f32.mrb[2].mxu0 }
  0xf7   : > { %v358_v13 = vadd.f32 %v357_v12, %v269_v11  ;;  %v359_v14 = vpop.f32.mrb[3].mxu0 }
  0xf8   : > { %v360_v15 = vadd.f32 %v359_v14, %v269_v11 }
  0xf9   : > { %v571_v16 = vmul.f32 -1.442695, %v358_v13 }
  0xfa   : > { %v572_v17 = vmul.f32 -1.442695, %v360_v15 }
  0xfb   : > { %643 = vpow2.f32 %v571_v16 }
  0xfc   : > { %645 = vpow2.f32 %v572_v17 }
 0x105   : > { %v644_v18 = vpop.eup %643 }
 0x106   : > { %v646_v19 = vpop.eup %645  ;;  %v368_v20 = vadd.f32 1.0, %v644_v18 }
 0x107   : > { %v369_v21 = vadd.f32 1.0, %v646_v19 }
 0x108   : > { %647 = vrcp.f32 %v368_v20 }
 0x109   : > { %649 = vrcp.f32 %v369_v21 }
 0x112   : > { %v648_v24 = vpop.eup %647 }
 0x113   : > { %v650_v26 = vpop.eup %649  ;;  %v374_v27 = vmul.f32 %v648_v24, %v352_v23 }
 0x114   : > { %v375_v28 = vmul.f32 %v650_v26, %v354_v25 }
 0x116   : > { %573 = vmatprep.subr.msk.mxu1 %vm280_vm0, %v375_v28 }
 0x117   : > { %574 = vmatpush1.msk.msra.mxu1 %vm280_vm0, %v374_v27 }
 0x118   : > { %575 = vmatmul.mubr.msk.f32.vlgmr.msra.gmra.mrb[0].mxu1 %vm273_vm1, %v256_v29 }
 0x1eb   : > { %v456_v31 = vpop.f32.mrb[0].mxu1 }
 0x1ec   : > { %v457_v32 = vadd.f32 %v456_v31, %v379_v30  ;;  %v458_v33 = vpop.f32.mrb[1].mxu1 }
 0x1ed   : > { %v459_v34 = vadd.f32 %v458_v33, %v379_v30 }
 0x1ef   : > { %v463_v35 = vcombine.low %v457_v32, %v459_v34 }
 0x1f1   : > { %465 = vst [vmem:[%s242_s12] sm:$0xff] %v463_v35 }
 0x1f2   : > { %664 = shalt.err (!%p661_p5)
}
 0x1f3   : > { %s665_s29 = scalar_lea.hbm %s854_s16, 128  ;;  %s669_s9 = scalar_lea.hbm %s906_s5, 256 }
 0x1f4   : > { %p666_p6 = scmp.ne.s32.totalorder %s854_s16, %s665_s29  ;;  %p670_p10 = scmp.lt.u32.totalorder %s854_s16, %s906_s5 }
 0x1f5   : > { %p671_p11 = scmp.lt.u32.totalorder %s669_s9, %s665_s29  ;;  %p673_p13 = scmp.lt.u32.totalorder %s665_s29, %s854_s16 }
 0x1f6   : > { %p667_p7 = pnand %p666_p6, %p804_p4 }
 0x1f7   : > { %p672_p12 = por %p671_p11, %p670_p10 }
 0x1f8   : > { %p668_p9 = pneg %p667_p7 }
 0x1f9   : > { %p674_p0 = por %p673_p13, %p672_p12 }
 0x1fb   : > { %p675_p1 = pnand %p674_p0, %p668_p9 }
 0x1fd   : > { %678 = shalt.err (!%p675_p1)
}
 0x1fe   : > { %583 = dma.vmem_to_hbm [thread:$0]  (%p804_p4), %s856_s13, 128, %s854_s16, %s467_s17  }
 0x1ff PF: > { %p589_p2 = scmp.ge.s32.totalorder %s729_s23, 2  ;;  %s495_s12 = sand.u32 1, %s709_s18  }
 0x200   : > { %s496_s14 = scalar_lea.sflag [#allocation3], %s495_s12 }
 0x201   : > { %p586_p3 = pnand %p589_p2, %p811_p8 }
 0x203   : > { %704 = dma.done.wait (!%p586_p3), %s496_s14, 128  }
 0x204   : > { %706 = vsyncadd (!%p586_p3), %s496_s14, 4294967168  ;;  %s18_s23 = sadd.s32 1, %s729_s23   ;;  %s909_s18 = smov %s713_s19 }
 0x205   : > { %p15_p5 = scmp.ge.s32.totalorder %s18_s23, 4   ;;  %s910_s19 = smov %s717_s20 }
 0x206   : > { %s911_s20 = smov %s817_s6  ;;  %s912_s21 = smov %s725_s22 }
 0x207   : > { %s913_s22 = smov %s915_s26  ;;  %17 = sbr.rel (!%p15_p5) target bundleno = 4 (0x4), region = 75 }
 0x20e   :  { %501 = vsyncpa [#allocation3], 1 }
 0x20f   :  { %503 = vsyncpa [#allocation3 + $0x1], 1 }

</bundles_post_ra>
